<compile_context>
chip_gen: v7x
topology: tpu7x:2x2x1
jax: 0.10.0
libtpu: 0.0.40
codegen_flags: <defaults>
</compile_context>

<pallas_src>
import math

import jax
import jax.numpy as jnp
from jax.experimental import pallas as pl
from jax.experimental.pallas import tpu as pltpu


def _round_up(x, m):
    return (x + m - 1) // m * m


def actor_prob_kernel(s_ref, w1_ref, w2_ref, w3_ref, wmu_ref,
                      b1_ref, b2_ref, b3_ref, bmu_ref, mu_ref):
    """One batch tile of the MLP: 3 x (Linear + ReLU) + mu head.

    s_ref  : (TM, state_dim) f32   streamed over the batch grid; cast to bf16
                                   here (VPU op hidden under DMA/MXU).
    w*_ref : (in, out)       bf16  resident (constant block index).
    b*_ref : (1, out)        f32   resident, lane offset 0 -> plain loads.
    mu_ref : (TM, act_dim)   f32
    """
    x = s_ref[...].astype(jnp.bfloat16)

    # hidden layer 1 + ReLU  (bf16 operands -> MXU, f32 accumulation)
    h = jnp.dot(x, w1_ref[...], preferred_element_type=jnp.float32) + b1_ref[...]
    h = jnp.maximum(h, 0.0).astype(jnp.bfloat16)

    # hidden layer 2 + ReLU
    h = jnp.dot(h, w2_ref[...], preferred_element_type=jnp.float32) + b2_ref[...]
    h = jnp.maximum(h, 0.0).astype(jnp.bfloat16)

    # hidden layer 3 + ReLU
    h = jnp.dot(h, w3_ref[...], preferred_element_type=jnp.float32) + b3_ref[...]
    h = jnp.maximum(h, 0.0).astype(jnp.bfloat16)

    # mu head (f32 output)
    mu_ref[...] = (jnp.dot(h, wmu_ref[...], preferred_element_type=jnp.float32)
                   + bmu_ref[...])


def _choose_batch_tile(batch):
    """Pick (tile_rows, num_tiles) for the batch grid.

    - batch <= 512: one exact block (block dim == full array dim is always a
      legal BlockSpec), zero padding, zero extra grid overhead.
    - larger: big tiles (kernel is overhead/HBM-bound), capped at 2048 rows,
      sized so the grid has >=2 steps -> both v7x TensorCores get work.
      Tiles stay a multiple of 16 (bf16 sublane packing after the in-kernel
      cast). Working set at TM=2048 is ~2 MiB, far under the 32 MiB scoped
      VMEM limit even on v7x (64 MiB physical).
    """
    if batch <= 512:
        return batch, 1
    tm = min(2048, _round_up(pl.cdiv(batch, 2), 16), _round_up(batch, 16))
    return tm, pl.cdiv(batch, tm)


@jax.jit
def actor_prob_forward(s, params):
    """s: (batch, *state_shape) float32. params: kernel-ready (see init_params).

    Returns ((mu, sigma), None) matching the PyTorch module.
    """
    (w1, b1), (w2, b2), (w3, b3), (wmu, bmu), sigma_p = params
    batch = s.shape[0]
    s2d = s.reshape(batch, -1).astype(jnp.float32)      # glue: s.view(batch, -1)
    state_dim = s2d.shape[1]
    d1, d2, d3 = w1.shape[1], w2.shape[1], w3.shape[1]
    dact = wmu.shape[1]

    tm, num_tiles = _choose_batch_tile(batch)

    in_specs = [
        pl.BlockSpec((tm, state_dim), lambda i: (i, 0)),   # streamed activations
        pl.BlockSpec((state_dim, d1), lambda i: (0, 0)),   # resident weights
        pl.BlockSpec((d1, d2), lambda i: (0, 0)),
        pl.BlockSpec((d2, d3), lambda i: (0, 0)),
        pl.BlockSpec((d3, dact), lambda i: (0, 0)),
        pl.BlockSpec((1, d1), lambda i: (0, 0)),           # lane-aligned biases
        pl.BlockSpec((1, d2), lambda i: (0, 0)),
        pl.BlockSpec((1, d3), lambda i: (0, 0)),
        pl.BlockSpec((1, dact), lambda i: (0, 0)),
    ]
    out_specs = pl.BlockSpec((tm, dact), lambda i: (i, 0))

    mu = pl.pallas_call(
        actor_prob_kernel,
        out_shape=jax.ShapeDtypeStruct((batch, dact), jnp.float32),
        grid=(num_tiles,),
        in_specs=in_specs,
        out_specs=out_specs,
        compiler_params=pltpu.CompilerParams(
            dimension_semantics=("parallel",),
            vmem_limit_bytes=32 * 1024 * 1024,
        ),
    )(s2d, w1, w2, w3, wmu, b1, b2, b3, bmu)

    # sigma does not depend on s: exp(sigma_param.view(1,-1)) broadcast over the
    # batch, computed in the wrapper (hoisted out of the kernel). The broadcast
    # is kept only for PyTorch shape parity; callers can use sigma_row directly.
    sigma_row = jnp.exp(sigma_p.reshape(1, dact).astype(jnp.float32))
    sigma = jnp.broadcast_to(sigma_row, (batch, dact))

    return (mu, sigma), None


def init_params(key, state_dim, layer, act_dim):
    """Init mimicking PyTorch nn.Linear defaults (uniform +-1/sqrt(fan_in)).

    Params are stored kernel-ready (hoisted out of the per-call forward):
      weights: (in, out) bf16, biases: (1, out) f32, sigma_param: (act_dim, 1) f32.
    """
    dims = [state_dim] + list(layer) + [act_dim]
    params = []
    for i in range(len(dims) - 1):
        key, kw, kb = jax.random.split(key, 3)
        bound = 1.0 / math.sqrt(dims[i])
        w = jax.random.uniform(kw, (dims[i], dims[i + 1]), jnp.float32, -bound, bound)
        b = jax.random.uniform(kb, (dims[i + 1],), jnp.float32, -bound, bound)
        params.append((w.astype(jnp.bfloat16), b.reshape(1, -1).astype(jnp.float32)))
    sigma_p = jnp.zeros((act_dim, 1), jnp.float32)  # nn.Parameter(torch.zeros(act_dim, 1))
    params.append(sigma_p)
    return tuple(params)


def _reference_mu(s, params):
    """Pure-JAX reference with the same bf16/f32 dtype flow as the kernel."""
    (w1, b1), (w2, b2), (w3, b3), (wmu, bmu), _ = params
    x = s.reshape(s.shape[0], -1).astype(jnp.bfloat16)
    h = jnp.dot(x, w1, preferred_element_type=jnp.float32) + b1
    h = jnp.maximum(h, 0.0).astype(jnp.bfloat16)
    h = jnp.dot(h, w2, preferred_element_type=jnp.float32) + b2
    h = jnp.maximum(h, 0.0).astype(jnp.bfloat16)
    h = jnp.dot(h, w3, preferred_element_type=jnp.float32) + b3
    h = jnp.maximum(h, 0.0).astype(jnp.bfloat16)
    return jnp.dot(h, wmu, preferred_element_type=jnp.float32) + bmu


if __name__ == "__main__":
    key = jax.random.PRNGKey(0)

    # Small shapes consistent with the module:
    # state_shape=(4,16), layer=[64,64,32], action_shape=(8,)
    batch = 2
    state_shape = (4, 16)
    layer = [64, 64, 32]
    action_dim = 8
    state_dim = int(math.prod(state_shape))

    key, k_s, k_p = jax.random.split(key, 3)
    s = jax.random.normal(k_s, (batch,) + state_shape, jnp.float32)
    params = init_params(k_p, state_dim, layer, action_dim)

    (mu, sigma), extra = actor_prob_forward(s, params)
    jax.block_until_ready((mu, sigma))

    # sanity: shapes, sigma = exp(0) = 1, and mu matches a pure-JAX reference
    assert mu.shape == (batch, action_dim)
    assert sigma.shape == (batch, action_dim)
    assert extra is None
    assert bool(jnp.allclose(sigma, 1.0))
    mu_ref = _reference_mu(s, params)
    assert bool(jnp.allclose(mu, mu_ref, rtol=1e-2, atol=1e-2))

    print("KERNEL_OK")
</pallas_src>

<mosaic_0001>
module attributes {stable_mosaic.version = 11 : i64} {
  func.func @actor_prob_kernel(%arg0: i32, %arg1: memref<2x64xf32, #tpu.memory_space<vmem>>, %arg2: memref<64x64xbf16, #tpu.memory_space<vmem>>, %arg3: memref<64x64xbf16, #tpu.memory_space<vmem>>, %arg4: memref<64x32xbf16, #tpu.memory_space<vmem>>, %arg5: memref<32x8xbf16, #tpu.memory_space<vmem>>, %arg6: memref<1x64xf32, #tpu.memory_space<vmem>>, %arg7: memref<1x64xf32, #tpu.memory_space<vmem>>, %arg8: memref<1x32xf32, #tpu.memory_space<vmem>>, %arg9: memref<1x8xf32, #tpu.memory_space<vmem>>, %arg10: memref<2x8xf32, #tpu.memory_space<vmem>>) attributes {dimension_semantics = [#tpu.dimension_semantics<parallel>], iteration_bounds = array<i64: 1>, scalar_prefetch = 0 : i64, scratch_operands = 0 : i64, tpu.core_type = #tpu.core_type<tc>, window_params = [{transform_indices = @transform_0, window_bounds = array<i64: 2, 64>}, {pipeline_mode = #tpu.pipeline_mode<synchronous>, transform_indices = @transform_1, window_bounds = array<i64: 64, 64>}, {pipeline_mode = #tpu.pipeline_mode<synchronous>, transform_indices = @transform_2, window_bounds = array<i64: 64, 64>}, {pipeline_mode = #tpu.pipeline_mode<synchronous>, transform_indices = @transform_3, window_bounds = array<i64: 64, 32>}, {pipeline_mode = #tpu.pipeline_mode<synchronous>, transform_indices = @transform_4, window_bounds = array<i64: 32, 8>}, {pipeline_mode = #tpu.pipeline_mode<synchronous>, transform_indices = @transform_5, window_bounds = array<i64: 1, 64>}, {pipeline_mode = #tpu.pipeline_mode<synchronous>, transform_indices = @transform_6, window_bounds = array<i64: 1, 64>}, {pipeline_mode = #tpu.pipeline_mode<synchronous>, transform_indices = @transform_7, window_bounds = array<i64: 1, 32>}, {pipeline_mode = #tpu.pipeline_mode<synchronous>, transform_indices = @transform_8, window_bounds = array<i64: 1, 8>}, {transform_indices = @transform_9, window_bounds = array<i64: 2, 8>}]} {
    %c0 = arith.constant 0 : index
    %c0_0 = arith.constant 0 : index
    %0 = vector.load %arg1[%c0, %c0_0] : memref<2x64xf32, #tpu.memory_space<vmem>>, vector<2x64xf32>
    %1 = arith.truncf %0 : vector<2x64xf32> to vector<2x64xbf16>
    %c0_1 = arith.constant 0 : index
    %c0_2 = arith.constant 0 : index
    %2 = vector.load %arg2[%c0_1, %c0_2] : memref<64x64xbf16, #tpu.memory_space<vmem>>, vector<64x64xbf16>
    %cst = arith.constant dense<0.000000e+00> : vector<2x64xf32>
    %3 = tpu.matmul %1, %2, %cst {dimension_numbers = #tpu.dot_dimension_numbers<[1], [0], [0], [1], [0, 0, 1, 1], [], []>} : vector<2x64xbf16>, vector<64x64xbf16>, vector<2x64xf32> -> vector<2x64xf32>
    %c0_3 = arith.constant 0 : index
    %c0_4 = arith.constant 0 : index
    %4 = vector.load %arg6[%c0_3, %c0_4] : memref<1x64xf32, #tpu.memory_space<vmem>>, vector<1x64xf32>
    %5 = vector.broadcast %4 : vector<1x64xf32> to vector<2x64xf32>
    %6 = arith.addf %3, %5 : vector<2x64xf32>
    %cst_5 = arith.constant 0.000000e+00 : f32
    %7 = vector.broadcast %cst_5 : f32 to vector<2x64xf32>
    %8 = arith.maximumf %6, %7 : vector<2x64xf32>
    %9 = arith.truncf %8 : vector<2x64xf32> to vector<2x64xbf16>
    %c0_6 = arith.constant 0 : index
    %c0_7 = arith.constant 0 : index
    %10 = vector.load %arg3[%c0_6, %c0_7] : memref<64x64xbf16, #tpu.memory_space<vmem>>, vector<64x64xbf16>
    %cst_8 = arith.constant dense<0.000000e+00> : vector<2x64xf32>
    %11 = tpu.matmul %9, %10, %cst_8 {dimension_numbers = #tpu.dot_dimension_numbers<[1], [0], [0], [1], [0, 0, 1, 1], [], []>} : vector<2x64xbf16>, vector<64x64xbf16>, vector<2x64xf32> -> vector<2x64xf32>
    %c0_9 = arith.constant 0 : index
    %c0_10 = arith.constant 0 : index
    %12 = vector.load %arg7[%c0_9, %c0_10] : memref<1x64xf32, #tpu.memory_space<vmem>>, vector<1x64xf32>
    %13 = vector.broadcast %12 : vector<1x64xf32> to vector<2x64xf32>
    %14 = arith.addf %11, %13 : vector<2x64xf32>
    %cst_11 = arith.constant 0.000000e+00 : f32
    %15 = vector.broadcast %cst_11 : f32 to vector<2x64xf32>
    %16 = arith.maximumf %14, %15 : vector<2x64xf32>
    %17 = arith.truncf %16 : vector<2x64xf32> to vector<2x64xbf16>
    %c0_12 = arith.constant 0 : index
    %c0_13 = arith.constant 0 : index
    %18 = vector.load %arg4[%c0_12, %c0_13] : memref<64x32xbf16, #tpu.memory_space<vmem>>, vector<64x32xbf16>
    %cst_14 = arith.constant dense<0.000000e+00> : vector<2x32xf32>
    %19 = tpu.matmul %17, %18, %cst_14 {dimension_numbers = #tpu.dot_dimension_numbers<[1], [0], [0], [1], [0, 0, 1, 1], [], []>} : vector<2x64xbf16>, vector<64x32xbf16>, vector<2x32xf32> -> vector<2x32xf32>
    %c0_15 = arith.constant 0 : index
    %c0_16 = arith.constant 0 : index
    %20 = vector.load %arg8[%c0_15, %c0_16] : memref<1x32xf32, #tpu.memory_space<vmem>>, vector<1x32xf32>
    %21 = vector.broadcast %20 : vector<1x32xf32> to vector<2x32xf32>
    %22 = arith.addf %19, %21 : vector<2x32xf32>
    %cst_17 = arith.constant 0.000000e+00 : f32
    %23 = vector.broadcast %cst_17 : f32 to vector<2x32xf32>
    %24 = arith.maximumf %22, %23 : vector<2x32xf32>
    %25 = arith.truncf %24 : vector<2x32xf32> to vector<2x32xbf16>
    %c0_18 = arith.constant 0 : index
    %c0_19 = arith.constant 0 : index
    %26 = vector.load %arg5[%c0_18, %c0_19] : memref<32x8xbf16, #tpu.memory_space<vmem>>, vector<32x8xbf16>
    %cst_20 = arith.constant dense<0.000000e+00> : vector<2x8xf32>
    %27 = tpu.matmul %25, %26, %cst_20 {dimension_numbers = #tpu.dot_dimension_numbers<[1], [0], [0], [1], [0, 0, 1, 1], [], []>} : vector<2x32xbf16>, vector<32x8xbf16>, vector<2x8xf32> -> vector<2x8xf32>
    %c0_21 = arith.constant 0 : index
    %c0_22 = arith.constant 0 : index
    %28 = vector.load %arg9[%c0_21, %c0_22] : memref<1x8xf32, #tpu.memory_space<vmem>>, vector<1x8xf32>
    %29 = vector.broadcast %28 : vector<1x8xf32> to vector<2x8xf32>
    %30 = arith.addf %27, %29 : vector<2x8xf32>
    %c0_23 = arith.constant 0 : index
    %c0_24 = arith.constant 0 : index
    %31 = vector.load %arg10[%c0_23, %c0_24] : memref<2x8xf32, #tpu.memory_space<vmem>>, vector<2x8xf32>
    tpu.vector_store %arg10[%c0_23, %c0_24], %30 {strides = array<i32>} : memref<2x8xf32, #tpu.memory_space<vmem>>, vector<2x8xf32>,
    return
  }
  func.func @transform_0(%arg0: i32) -> (i32, i32) {
    %c0_i32 = arith.constant 0 : i32
    %c0_i32_0 = arith.constant 0 : i32
    return %arg0, %c0_i32 : i32, i32
  }
  func.func @transform_1(%arg0: i32) -> (i32, i32) {
    %c0_i32 = arith.constant 0 : i32
    %c0_i32_0 = arith.constant 0 : i32
    %c0_i32_1 = arith.constant 0 : i32
    return %c0_i32, %c0_i32_0 : i32, i32
  }
  func.func @transform_2(%arg0: i32) -> (i32, i32) {
    %c0_i32 = arith.constant 0 : i32
    %c0_i32_0 = arith.constant 0 : i32
    %c0_i32_1 = arith.constant 0 : i32
    return %c0_i32, %c0_i32_0 : i32, i32
  }
  func.func @transform_3(%arg0: i32) -> (i32, i32) {
    %c0_i32 = arith.constant 0 : i32
    %c0_i32_0 = arith.constant 0 : i32
    %c0_i32_1 = arith.constant 0 : i32
    return %c0_i32, %c0_i32_0 : i32, i32
  }
  func.func @transform_4(%arg0: i32) -> (i32, i32) {
    %c0_i32 = arith.constant 0 : i32
    %c0_i32_0 = arith.constant 0 : i32
    %c0_i32_1 = arith.constant 0 : i32
    return %c0_i32, %c0_i32_0 : i32, i32
  }
  func.func @transform_5(%arg0: i32) -> (i32, i32) {
    %c0_i32 = arith.constant 0 : i32
    %c0_i32_0 = arith.constant 0 : i32
    %c0_i32_1 = arith.constant 0 : i32
    return %c0_i32, %c0_i32_0 : i32, i32
  }
  func.func @transform_6(%arg0: i32) -> (i32, i32) {
    %c0_i32 = arith.constant 0 : i32
    %c0_i32_0 = arith.constant 0 : i32
    %c0_i32_1 = arith.constant 0 : i32
    return %c0_i32, %c0_i32_0 : i32, i32
  }
  func.func @transform_7(%arg0: i32) -> (i32, i32) {
    %c0_i32 = arith.constant 0 : i32
    %c0_i32_0 = arith.constant 0 : i32
    %c0_i32_1 = arith.constant 0 : i32
    return %c0_i32, %c0_i32_0 : i32, i32
  }
  func.func @transform_8(%arg0: i32) -> (i32, i32) {
    %c0_i32 = arith.constant 0 : i32
    %c0_i32_0 = arith.constant 0 : i32
    %c0_i32_1 = arith.constant 0 : i32
    return %c0_i32, %c0_i32_0 : i32, i32
  }
  func.func @transform_9(%arg0: i32) -> (i32, i32) {
    %c0_i32 = arith.constant 0 : i32
    %c0_i32_0 = arith.constant 0 : i32
    return %arg0, %c0_i32 : i32, i32
  }
}

</mosaic_0001>

<bundles_post_ra>
// kernel: actor_prob_forward.1
= control target key start
LH: loop header
LB: loop body
LE: loop exit
PB: predicated region body
PF: predicated region fallthrough
CT: control target
= control target key end

     0   :  { %v497_v1 = vmov 0.0   ;;  %vm498_vm0 = vmmov 0   ;;  %s626_s0 = inlined_call_operand.vmem [shape: f32[2,64], index: 0, kind: input, shape index: {}]   ;;  %s627_s1 = inlined_call_operand.vmem [shape: bf16[64,64], index: 1, kind: input, shape index: {}]   ;;  %s628_s2 = inlined_call_operand.vmem [shape: bf16[64,64], index: 2, kind: input, shape index: {}]   ;;  %s629_s3 = inlined_call_operand.vmem [shape: bf16[64,32], index: 3, kind: input, shape index: {}]   ;;  %s630_s4 = inlined_call_operand.vmem [shape: bf16[32,8], index: 4, kind: input, shape index: {}]   ;;  %s631_s5 = inlined_call_operand.vmem [shape: f32[1,64], index: 5, kind: input, shape index: {}]   ;;  %s632_s6 = inlined_call_operand.vmem [shape: f32[1,64], index: 6, kind: input, shape index: {}]   ;;  %s633_s7 = inlined_call_operand.vmem [shape: f32[1,32], index: 7, kind: input, shape index: {}]   ;;  %s634_s8 = inlined_call_operand.vmem [shape: f32[1,8], index: 8, kind: input, shape index: {}]   ;;  %s635_s9 = inlined_call_operand.hbm [shape: f32[2,8], index: 9, kind: output, shape index: {}]  }
   0x1   :  { %v459_v0 = vld [vmem:[%s627_s1] sm:$0xff]   ;;  %412 = vmatprep.subr.bf16.mxu0 %v497_v1  ;;  %424 = vmatprep.subr.bf16.mxu1 %v497_v1  ;;  %v460_v2 = vld [vmem:[%s627_s1 + $0x8] sm:$0xff]   ;;  %v461_v4 = vld [vmem:[%s627_s1 + $0x10] sm:$0xff]  }
   0x2   :  { %413 = vmatpush3.bf16.msra.mxu0 %v459_v0  ;;  %420 = vmatprep.mubr.msk.bf16.mxu0 %vm498_vm0, %v497_v1  ;;  %v463_v3 = vld [vmem:[%s628_s2] sm:$0xff]   ;;  %v464_v5 = vld [vmem:[%s628_s2 + $0x8] sm:$0xff]   ;;  %v462_v6 = vld [vmem:[%s627_s1 + $0x18] sm:$0xff]  }
   0x3   :  { %414 = vmatprep.subr.bf16.mxu0 %v497_v1  ;;  %432 = vmatprep.mubr.msk.bf16.mxu1 %vm498_vm0, %v497_v1  ;;  %v34_v7 = vld [vmem:[%s626_s0] sm:$0x3] }
   0x4   :  { %425 = vmatpush3.bf16.msra.mxu1 %v463_v3 }
   0x5   :  { %426 = vmatprep.subr.bf16.mxu1 %v497_v1 }
   0x6   :  { %415 = vmatpush3.bf16.msra.mxu0 %v460_v2 }
   0x7   :  { %416 = vmatprep.subr.bf16.mxu0 %v497_v1 }
   0x8   :  { %427 = vmatpush3.bf16.msra.mxu1 %v464_v5 }
   0x9   :  { %428 = vmatprep.subr.bf16.mxu1 %v497_v1 }
   0xa   :  { %417 = vmatpush3.bf16.msra.mxu0 %v461_v4 }
   0xb   :  { %418 = vmatprep.subr.bf16.mxu0 %v497_v1 }
   0xc   :  { %14 = vsyncpa [#allocation3], 0  ;;  %v35_v8 = vpack.c.bf16 %v34_v7, %v34_v7  ;;  %vm75_vm1 = vcmask 523264   ;;  %v465_v9 = vld [vmem:[%s628_s2 + $0x10] sm:$0xff]   ;;  %v466_v10 = vld [vmem:[%s628_s2 + $0x18] sm:$0xff]   ;;  %vm312_vm2 = vcmask 261120  }
   0xd   :  { %429 = vmatpush3.bf16.msra.mxu1 %v465_v9  ;;  %v467_v11 = vld [vmem:[%s629_s3] sm:$0xff]   ;;  %v468_v12 = vld [vmem:[%s629_s3 + $0x8] sm:$0xff]   ;;  %v469_v21 = vld [vmem:[%s629_s3 + $0x10] sm:$0xff]   ;;  %s499_s20 = smov [#allocation2]   ;;  %vm356_vm3 = vcmask 58368  }
   0xe   :  { %419 = vmatpush3.bf16.msra.mxu0 %v462_v6  ;;  %430 = vmatprep.subr.bf16.mxu1 %v497_v1  ;;  %v372_v13 = vld [vmem:[%s631_s5] ss:$0 sm:$0xff]  ;;  %v470_v22 = vld [vmem:[%s629_s3 + $0x18] sm:$0xff]   ;;  %v472_v32 = vld [vmem:[%s630_s4 + $0x8] sm:$0xff]  }
   0xf   :  { %436 = vmatprep.subr.bf16.mxu0 %v497_v1  ;;  %v471_v23 = vld [vmem:[%s630_s4] sm:$0xff]   ;;  %s364_s4 = sshll.u32 %s499_s20, 4  ;;  %s365_s4 = int_to_ptr.vmem [resolvable:$true] %s364_s4 }
  0x10   :  { %v378_v24 = vld [vmem:[%s632_s6] ss:$0 sm:$0xff]  ;;  %p478_p1 = scmp.lt.s32.totalorder %s365_s4, %s365_s4 }
  0x11   :  { %421 = vmatmul.mubr.msk.bf16.vlgmr.msra.gmra.mrb[0].mxu0 %vm75_vm1, %v35_v8  ;;  %431 = vmatpush3.bf16.msra.mxu1 %v466_v10  ;;  %v384_v33 = vld [vmem:[%s633_s7] ss:$0 sm:$0xff]  ;;  %s473_s7 = scalar_lea.vmem %s365_s4, 32 }
  0x12   :  { %444 = vmatprep.mubr.msk.bf16.mxu0 %vm498_vm0, %v497_v1  ;;  %448 = vmatprep.subr.bf16.mxu1 %v497_v1  ;;  %v390_v41 = vld [vmem:[%s634_s8] ss:$0 sm:$0xff]  ;;  %p474_p0 = scmp.ne.s32.totalorder %s365_s4, %s473_s7  ;;  %p479_p2 = scmp.lt.s32.totalorder %s473_s7, %s473_s7 }
  0x13   :  { %437 = vmatpush3.bf16.msra.mxu0 %v467_v11 }
  0x14   :  { %438 = vmatprep.subr.bf16.mxu0 %v497_v1  ;;  %p480_p3 = por %p479_p2, %p478_p1 }
  0x16   :  { %p481_p4 = pnand %p480_p3, %p474_p0 }
  0x17   :  { %439 = vmatpush3.bf16.msra.mxu0 %v468_v12 }
  0x18   :  { %440 = vmatprep.subr.bf16.mxu0 %v497_v1 }
  0x1b   :  { %441 = vmatpush3.bf16.msra.mxu0 %v469_v21 }
  0x1c   :  { %442 = vmatprep.subr.bf16.mxu0 %v497_v1 }
  0x1f   :  { %443 = vmatpush3.bf16.msra.mxu0 %v470_v22 }
  0xe4   :  { %v113_v14 = vpop.f32.mrb[0].mxu0 }
  0xe5   :  { %v114_v15 = vadd.f32 %v372_v13, %v113_v14  ;;  %v422_v16 = vpop.f32.mrb[1].mxu0 }
  0xe6   :  { %v116_v17 = vpop.f32.mrb[2].mxu0 }
  0xe7   :  { %v119_v18 = vmax.f32 %v114_v15, 0.0  ;;  %v423_v19 = vpop.f32.mrb[3].mxu0 }
  0xe9   :  { %v120_v20 = vpack.c.bf16 %v119_v18, %v119_v18 }
  0xeb   :  { %433 = vmatmul.mubr.msk.bf16.vlgmr.msra.gmra.mrb[0].mxu1 %vm75_vm1, %v120_v20 }
  0xec   :  { %452 = vmatprep.mubr.msk.bf16.mxu1 %vm498_vm0, %v497_v1  ;;  %449 = vmatpush3.bf16.msra.mxu1 %v471_v23 }
  0xed   :  { %450 = vmatprep.subr.bf16.mxu1 %v497_v1 }
  0xf0   :  { %451 = vmatpush3.bf16.msra.mxu1 %v472_v32 }
 0x1be   :  { %v197_v25 = vpop.f32.mrb[0].mxu1 }
 0x1bf   :  { %v198_v26 = vadd.f32 %v378_v24, %v197_v25  ;;  %v434_v27 = vpop.f32.mrb[1].mxu1 }
 0x1c0   :  { %v200_v28 = vpop.f32.mrb[2].mxu1 }
 0x1c1   :  { %v203_v29 = vmax.f32 %v198_v26, 0.0  ;;  %v435_v30 = vpop.f32.mrb[3].mxu1 }
 0x1c3   :  { %v204_v31 = vpack.c.bf16 %v203_v29, %v203_v29 }
 0x1c5   :  { %445 = vmatmul.mubr.msk.bf16.vlgmr.msra.gmra.mrb[4].mxu0 %vm75_vm1, %v204_v31 }
 0x298   :  { %v281_v34 = vpop.f32.mrb[4].mxu0 }
 0x299   :  { %v282_v35 = vadd.f32 %v384_v33, %v281_v34  ;;  %v446_v36 = vpop.f32.mrb[5].mxu0 }
 0x29a   :  { %v284_v37 = vpop.f32.mrb[6].mxu0 }
 0x29b   :  { %v287_v38 = vmax.f32 %v282_v35, 0.0  ;;  %v447_v39 = vpop.f32.mrb[7].mxu0 }
 0x29d   :  { %v288_v40 = vpack.c.bf16 %v287_v38, %v287_v38 }
 0x29f   :  { %453 = vmatmul.mubr.msk.bf16.vlgmr.msra.gmra.mrb[4].mxu1 %vm312_vm2, %v288_v40 }
 0x372   :  { %v350_v42 = vpop.f32.mrb[4].mxu1 }
 0x373   :  { %v351_v43 = vadd.f32 %v390_v41, %v350_v42  ;;  %v454_v44 = vpop.f32.mrb[5].mxu1 }
 0x374   :  { %v353_v45 = vpop.f32.mrb[6].mxu1 }
 0x375   :  { %v455_v46 = vpop.f32.mrb[7].mxu1  ;;  %357 = vst.msk [vmem:[#allocation2] sm:$0x3] %vm356_vm3, %v351_v43 }
 0x376   :  { %484 = shalt.err (!%p481_p4)
}
 0x377   :  { %s485_s8 = scalar_lea.hbm %s635_s9, 32 }
 0x378   :  { %p486_p5 = scmp.ne.s32.totalorder %s635_s9, %s485_s8  ;;  %p489_p6 = scmp.lt.u32.totalorder %s485_s8, %s635_s9 }
 0x37a   :  { %p491_p7 = pnand %p489_p6, %p486_p5 }
 0x37c   :  { %494 = shalt.err (!%p491_p7)
}
 0x37d   :  { %367 = dma.vmem_to_hbm [thread:$0]  %s365_s4, 32, %s635_s9, [#allocation3]  }
 0x37e   :  { %495 = dma.done.wait [#allocation3], 32  }
 0x37f   :  { %496 = vsyncadd [#allocation3], 4294967264 }
 0x380   :  { %371 = vsyncpa [#allocation3], 1 }

</bundles_post_ra>
